<compile_context>
chip_gen: v7x
topology: tpu7x:2x2x1
jax: 0.10.0
libtpu: 0.0.40
codegen_flags: <defaults>
</compile_context>

<pallas_src>
import functools

import jax
import jax.numpy as jnp
from jax.experimental import pallas as pl
from jax.experimental.pallas import tpu as pltpu


def _round_up(a, b):
    return (a + b - 1) // b * b


def _default_vmem_limit_bytes():
    # ~3/4 of physical VMEM (96 MiB on v5e/v6e, 48 MiB on v7x); conservative fallback.
    try:
        cap = pltpu.get_tpu_info().vmem_capacity_bytes
        return int(cap * 3 // 4)
    except Exception:
        return 48 * 1024 * 1024


def _pick_bf(d_ff_p, cap):
    """Largest multiple-of-128 divisor of d_ff_p that is <= cap (>= 128)."""
    n = d_ff_p // 128
    best = 128
    for d in range(1, n + 1):
        size = d * 128
        if n % d == 0 and size <= cap:
            best = size
    return best


# ----------------------------------------------------------------------------------
# Kernels
# ----------------------------------------------------------------------------------
def _mlp_resident_kernel(x_ref, w1_ref, b1_ref, w2_ref, b2_ref, o_ref):
    """Weights fully VMEM-resident (constant index_map) — single-shot MLP per row tile."""
    h = jnp.dot(x_ref[...], w1_ref[...], preferred_element_type=jnp.float32)
    h = jnp.maximum(h + b1_ref[...], 0.0)
    # TODO(synk): dropout p>0 would mask h here (pltpu.prng_seed + prng_random_bits).
    out = jnp.dot(h.astype(w2_ref.dtype), w2_ref[...],
                  preferred_element_type=jnp.float32)
    o_ref[...] = (out + b2_ref[...]).astype(o_ref.dtype)


def _mlp_streaming_kernel(x_ref, w1_ref, b1_ref, w2_ref, b2_ref, o_ref, acc_ref):
    """d_ff tiled on the last ("arbitrary") grid axis with an f32 VMEM accumulator."""
    ff = pl.program_id(1)

    @pl.when(ff == 0)
    def _init():
        acc_ref[...] = jnp.zeros_like(acc_ref)

    # h_chunk = relu(x @ W1[:, ff_tile] + b1[ff_tile])   (MXU, f32 accumulation)
    h = jnp.dot(x_ref[...], w1_ref[...], preferred_element_type=jnp.float32)
    h = jnp.maximum(h + b1_ref[...], 0.0)
    # TODO(synk): dropout p>0 would mask h here (pltpu.prng_seed + prng_random_bits).

    # Partial second matmul: acc += h_chunk @ W2[ff_tile, :]
    acc_ref[...] += jnp.dot(h.astype(w2_ref.dtype), w2_ref[...],
                            preferred_element_type=jnp.float32)

    @pl.when(ff == pl.num_programs(1) - 1)
    def _finalize():
        o_ref[...] = (acc_ref[...] + b2_ref[...]).astype(o_ref.dtype)


# ----------------------------------------------------------------------------------
# Parameter preparation (hoisted out of the per-call forward path)
# ----------------------------------------------------------------------------------
def prepare_params(w1, b1, w2, b2, *, compute_dtype=jnp.bfloat16):
    """Pad/cast parameters ONCE, outside the forward path.

    w1: (d_in, d_ff), w2: (d_ff, d_out) — pre-transposed vs. PyTorch nn.Linear.
    Feature dims are zero-padded to multiples of 128 (numerically exact), weight
    matrices are cast to `compute_dtype` (bf16 MXU operands), biases stay f32 and
    are added post-matmul in f32.
    """
    d_in, d_ff = w1.shape
    d_out = w2.shape[-1]
    d_in_p = _round_up(d_in, 128)
    d_ff_p = _round_up(d_ff, 128)
    d_out_p = _round_up(d_out, 128)

    if (d_in_p, d_ff_p) != (d_in, d_ff):
        w1 = jnp.pad(w1, ((0, d_in_p - d_in), (0, d_ff_p - d_ff)))
    if (d_ff_p, d_out_p) != (d_ff, d_out):
        w2 = jnp.pad(w2, ((0, d_ff_p - d_ff), (0, d_out_p - d_out)))
    if d_ff_p != d_ff:
        b1 = jnp.pad(b1, (0, d_ff_p - d_ff))
    if d_out_p != d_out:
        b2 = jnp.pad(b2, (0, d_out_p - d_out))

    return (w1.astype(compute_dtype),
            b1.astype(jnp.float32).reshape(1, d_ff_p),
            w2.astype(compute_dtype),
            b2.astype(jnp.float32).reshape(1, d_out_p))


# ----------------------------------------------------------------------------------
# Forward
# ----------------------------------------------------------------------------------
@functools.partial(jax.jit, static_argnames=("d_out", "block_m", "block_ff"))
def nonlinear_forward(x, w1, b1, w2, b2, *, d_out, block_m=512, block_ff=1024):
    """x: [..., d_in] -> [..., d_out]. Fused linear-relu-linear Pallas kernel.

    w1/b1/w2/b2 must come from prepare_params (padded to multiples of 128, bf16
    weights, f32 biases). `d_out` is the original (unpadded) output width.
    """
    d_in = x.shape[-1]
    lead = x.shape[:-1]
    m = 1
    for s in lead:
        m *= s

    d_in_p, d_ff_p = w1.shape
    d_out_p = w2.shape[-1]
    compute_dtype = w1.dtype
    out_dtype = x.dtype
    c_item = jnp.dtype(compute_dtype).itemsize
    o_item = jnp.dtype(out_dtype).itemsize

    vmem_limit = _default_vmem_limit_bytes()

    # ---- row tile: multiple of 16 (bf16 sublane tile); keep >=2 tiles for megacore ----
    bm = min(block_m, _round_up(m, 16))
    if _round_up(m, bm) // bm < 2 and m >= 256:
        bm = _round_up((m + 1) // 2, 16)

    # ---- static VMEM footprint estimates (double-buffered I/O, f32 intermediates) ----
    def _resident_vmem(bm_):
        w = (d_in_p * d_ff_p + d_ff_p * d_out_p) * c_item * 2
        b = (d_ff_p + d_out_p) * 4 * 2
        io = (bm_ * d_in_p * c_item + bm_ * d_out_p * o_item) * 2
        h = bm_ * d_ff_p * 4 * 2
        return w + b + io + h

    def _streaming_vmem(bm_, bf_):
        w = (d_in_p * bf_ + bf_ * d_out_p) * c_item * 2
        b = (bf_ + d_out_p) * 4 * 2
        io = (bm_ * d_in_p * c_item + bm_ * d_out_p * o_item) * 2
        acc = bm_ * d_out_p * 4
        h = bm_ * bf_ * 4 * 2
        return w + b + io + acc + h

    use_resident = _resident_vmem(bm) <= int(0.6 * vmem_limit)

    if use_resident:
        bf = d_ff_p
    else:
        bf = _pick_bf(d_ff_p, block_ff)
        # Shrink tiles until the footprint fits (v7x 64 MiB VMEM included).
        while (_streaming_vmem(bm, bf) > int(0.85 * vmem_limit)
               and (bf > 128 or bm > 128)):
            if bf > 128:
                bf = _pick_bf(d_ff_p, bf - 128)
            else:
                bm = max(128, _round_up(bm // 2, 16))

    m_p = _round_up(m, bm)

    # ---- per-call input padding (cheap; weights were padded once in prepare_params) ----
    x2 = x.reshape(m, d_in).astype(compute_dtype)
    if (m_p, d_in_p) != (m, d_in):
        x2 = jnp.pad(x2, ((0, m_p - m), (0, d_in_p - d_in)))

    # ---- grid / specs ----
    if use_resident:
        grid = (m_p // bm,)
        in_specs = [
            pl.BlockSpec((bm, d_in_p), lambda i: (i, 0)),          # x rows
            pl.BlockSpec((d_in_p, d_ff_p), lambda i: (0, 0)),      # W1 resident
            pl.BlockSpec((1, d_ff_p), lambda i: (0, 0)),           # b1 resident
            pl.BlockSpec((d_ff_p, d_out_p), lambda i: (0, 0)),     # W2 resident
            pl.BlockSpec((1, d_out_p), lambda i: (0, 0)),          # b2 resident
        ]
        out_specs = pl.BlockSpec((bm, d_out_p), lambda i: (i, 0))
        scratch_shapes = []
        dim_sem = ("parallel",)
        kernel = _mlp_resident_kernel
        weight_fetches = 1
    else:
        grid = (m_p // bm, d_ff_p // bf)
        in_specs = [
            pl.BlockSpec((bm, d_in_p), lambda i, j: (i, 0)),       # x rows (resident over ff)
            pl.BlockSpec((d_in_p, bf), lambda i, j: (0, j)),       # W1 column tile
            pl.BlockSpec((1, bf), lambda i, j: (0, j)),            # b1 tile
            pl.BlockSpec((bf, d_out_p), lambda i, j: (j, 0)),      # W2 row tile
            pl.BlockSpec((1, d_out_p), lambda i, j: (0, 0)),       # b2
        ]
        out_specs = pl.BlockSpec((bm, d_out_p), lambda i, j: (i, 0))
        scratch_shapes = [pltpu.VMEM((bm, d_out_p), jnp.float32)]
        dim_sem = ("parallel", "arbitrary")
        kernel = _mlp_streaming_kernel
        weight_fetches = m_p // bm

    flops = 2 * m_p * (d_in_p * d_ff_p + d_ff_p * d_out_p)
    bytes_accessed = (m_p * d_in_p * c_item
                      + weight_fetches * (d_in_p * d_ff_p + d_ff_p * d_out_p) * c_item
                      + m_p * d_out_p * o_item)

    out = pl.pallas_call(
        kernel,
        out_shape=jax.ShapeDtypeStruct((m_p, d_out_p), out_dtype),
        grid_spec=pltpu.PrefetchScalarGridSpec(
            num_scalar_prefetch=0,
            grid=grid,
            in_specs=in_specs,
            out_specs=out_specs,
            scratch_shapes=scratch_shapes,
        ),
        compiler_params=pltpu.CompilerParams(
            dimension_semantics=dim_sem,
            vmem_limit_bytes=vmem_limit,
        ),
        cost_estimate=pl.CostEstimate(
            flops=flops, transcendentals=0, bytes_accessed=bytes_accessed),
    )(x2, w1, b1, w2, b2)

    return out[:m, :d_out].reshape(*lead, d_out)


def init_params(key, d_in, d_ff, d_out, dtype=jnp.float32):
    """Deterministic init mimicking nn.Linear's U(-1/sqrt(fan_in), 1/sqrt(fan_in))."""
    k1, k2, k3, k4 = jax.random.split(key, 4)
    lim1 = 1.0 / (d_in ** 0.5)
    lim2 = 1.0 / (d_ff ** 0.5)
    # Stored pre-transposed relative to PyTorch's (out, in) convention.
    w1 = jax.random.uniform(k1, (d_in, d_ff), dtype, -lim1, lim1)
    b1 = jax.random.uniform(k2, (d_ff,), dtype, -lim1, lim1)
    w2 = jax.random.uniform(k3, (d_ff, d_out), dtype, -lim2, lim2)
    b2 = jax.random.uniform(k4, (d_out,), dtype, -lim2, lim2)
    return w1, b1, w2, b2


if __name__ == "__main__":
    key = jax.random.PRNGKey(0)
    batch, seq, d_in, d_ff, d_out = 2, 8, 32, 64, 32

    kx, kp = jax.random.split(key)
    x = jax.random.normal(kx, (batch, seq, d_in), jnp.float32)
    w1, b1, w2, b2 = init_params(kp, d_in, d_ff, d_out)

    # Pad + cast weights once (hoisted out of the per-call path).
    params = prepare_params(w1, b1, w2, b2)

    y = nonlinear_forward(x, *params, d_out=d_out)
    y = jax.block_until_ready(y)

    # Pure-JAX reference mirroring the kernel's numerics
    # (bf16 MXU operands, f32 accumulation; dropout p=0.0 is identity).
    f32 = jnp.float32
    xb = x.astype(jnp.bfloat16).astype(f32)
    w1b = w1.astype(jnp.bfloat16).astype(f32)
    w2b = w2.astype(jnp.bfloat16).astype(f32)
    h_ref = jnp.maximum(xb @ w1b + b1, 0.0).astype(jnp.bfloat16).astype(f32)
    ref = h_ref @ w2b + b2

    assert y.shape == (batch, seq, d_out)
    assert jnp.allclose(y, ref, atol=2e-2, rtol=2e-2), "mismatch vs reference"

    print("KERNEL_OK")
</pallas_src>

<mosaic_0001>
module attributes {stable_mosaic.version = 11 : i64} {
  func.func @_mlp_resident_kernel(%arg0: i32, %arg1: memref<16x128xbf16, #tpu.memory_space<vmem>>, %arg2: memref<128x128xbf16, #tpu.memory_space<vmem>>, %arg3: memref<1x128xf32, #tpu.memory_space<vmem>>, %arg4: memref<128x128xbf16, #tpu.memory_space<vmem>>, %arg5: memref<1x128xf32, #tpu.memory_space<vmem>>, %arg6: memref<16x128xf32, #tpu.memory_space<vmem>>) attributes {dimension_semantics = [#tpu.dimension_semantics<parallel>], iteration_bounds = array<i64: 1>, scalar_prefetch = 0 : i64, scratch_operands = 0 : i64, tpu.core_type = #tpu.core_type<tc>, window_params = [{transform_indices = @transform_0, window_bounds = array<i64: 16, 128>}, {pipeline_mode = #tpu.pipeline_mode<synchronous>, transform_indices = @transform_1, window_bounds = array<i64: 128, 128>}, {pipeline_mode = #tpu.pipeline_mode<synchronous>, transform_indices = @transform_2, window_bounds = array<i64: 1, 128>}, {pipeline_mode = #tpu.pipeline_mode<synchronous>, transform_indices = @transform_3, window_bounds = array<i64: 128, 128>}, {pipeline_mode = #tpu.pipeline_mode<synchronous>, transform_indices = @transform_4, window_bounds = array<i64: 1, 128>}, {transform_indices = @transform_5, window_bounds = array<i64: 16, 128>}]} {
    %c0 = arith.constant 0 : index
    %c0_0 = arith.constant 0 : index
    %0 = vector.load %arg1[%c0, %c0_0] : memref<16x128xbf16, #tpu.memory_space<vmem>>, vector<16x128xbf16>
    %c0_1 = arith.constant 0 : index
    %c0_2 = arith.constant 0 : index
    %1 = vector.load %arg2[%c0_1, %c0_2] : memref<128x128xbf16, #tpu.memory_space<vmem>>, vector<128x128xbf16>
    %cst = arith.constant dense<0.000000e+00> : vector<16x128xf32>
    %2 = tpu.matmul %0, %1, %cst {dimension_numbers = #tpu.dot_dimension_numbers<[1], [0], [0], [1], [0, 0, 1, 1], [], []>} : vector<16x128xbf16>, vector<128x128xbf16>, vector<16x128xf32> -> vector<16x128xf32>
    %c0_3 = arith.constant 0 : index
    %c0_4 = arith.constant 0 : index
    %3 = vector.load %arg3[%c0_3, %c0_4] : memref<1x128xf32, #tpu.memory_space<vmem>>, vector<1x128xf32>
    %4 = vector.broadcast %3 : vector<1x128xf32> to vector<16x128xf32>
    %5 = arith.addf %2, %4 : vector<16x128xf32>
    %cst_5 = arith.constant 0.000000e+00 : f32
    %6 = vector.broadcast %cst_5 : f32 to vector<16x128xf32>
    %7 = arith.maximumf %5, %6 : vector<16x128xf32>
    %8 = arith.truncf %7 : vector<16x128xf32> to vector<16x128xbf16>
    %c0_6 = arith.constant 0 : index
    %c0_7 = arith.constant 0 : index
    %9 = vector.load %arg4[%c0_6, %c0_7] : memref<128x128xbf16, #tpu.memory_space<vmem>>, vector<128x128xbf16>
    %cst_8 = arith.constant dense<0.000000e+00> : vector<16x128xf32>
    %10 = tpu.matmul %8, %9, %cst_8 {dimension_numbers = #tpu.dot_dimension_numbers<[1], [0], [0], [1], [0, 0, 1, 1], [], []>} : vector<16x128xbf16>, vector<128x128xbf16>, vector<16x128xf32> -> vector<16x128xf32>
    %c0_9 = arith.constant 0 : index
    %c0_10 = arith.constant 0 : index
    %11 = vector.load %arg5[%c0_9, %c0_10] : memref<1x128xf32, #tpu.memory_space<vmem>>, vector<1x128xf32>
    %12 = vector.broadcast %11 : vector<1x128xf32> to vector<16x128xf32>
    %13 = arith.addf %10, %12 : vector<16x128xf32>
    %c0_11 = arith.constant 0 : index
    %c0_12 = arith.constant 0 : index
    %14 = vector.load %arg6[%c0_11, %c0_12] : memref<16x128xf32, #tpu.memory_space<vmem>>, vector<16x128xf32>
    tpu.vector_store %arg6[%c0_11, %c0_12], %13 {strides = array<i32>} : memref<16x128xf32, #tpu.memory_space<vmem>>, vector<16x128xf32>,
    return
  }
  func.func @transform_0(%arg0: i32) -> (i32, i32) {
    %c0_i32 = arith.constant 0 : i32
    %c0_i32_0 = arith.constant 0 : i32
    return %arg0, %c0_i32 : i32, i32
  }
  func.func @transform_1(%arg0: i32) -> (i32, i32) {
    %c0_i32 = arith.constant 0 : i32
    %c0_i32_0 = arith.constant 0 : i32
    %c0_i32_1 = arith.constant 0 : i32
    return %c0_i32, %c0_i32_0 : i32, i32
  }
  func.func @transform_2(%arg0: i32) -> (i32, i32) {
    %c0_i32 = arith.constant 0 : i32
    %c0_i32_0 = arith.constant 0 : i32
    %c0_i32_1 = arith.constant 0 : i32
    return %c0_i32, %c0_i32_0 : i32, i32
  }
  func.func @transform_3(%arg0: i32) -> (i32, i32) {
    %c0_i32 = arith.constant 0 : i32
    %c0_i32_0 = arith.constant 0 : i32
    %c0_i32_1 = arith.constant 0 : i32
    return %c0_i32, %c0_i32_0 : i32, i32
  }
  func.func @transform_4(%arg0: i32) -> (i32, i32) {
    %c0_i32 = arith.constant 0 : i32
    %c0_i32_0 = arith.constant 0 : i32
    %c0_i32_1 = arith.constant 0 : i32
    return %c0_i32, %c0_i32_0 : i32, i32
  }
  func.func @transform_5(%arg0: i32) -> (i32, i32) {
    %c0_i32 = arith.constant 0 : i32
    %c0_i32_0 = arith.constant 0 : i32
    return %arg0, %c0_i32 : i32, i32
  }
}

</mosaic_0001>

<bundles_post_ra>
// kernel: nonlinear_forward.1
= control target key start
LH: loop header
LB: loop body
LE: loop exit
PB: predicated region body
PF: predicated region fallthrough
CT: control target
= control target key end

     0   :  { %10 = vsyncpa [#allocation3], 0  ;;  %s515_s0 = inlined_call_operand.vmem [shape: bf16[16,128], index: 0, kind: input, shape index: {}]   ;;  %s516_s1 = inlined_call_operand.hbm [shape: bf16[128,128], index: 1, kind: input, shape index: {}]   ;;  %s517_s2 = inlined_call_operand.vmem [shape: f32[1,128], index: 2, kind: input, shape index: {}]   ;;  %s518_s3 = inlined_call_operand.hbm [shape: bf16[128,128], index: 3, kind: input, shape index: {}]   ;;  %s519_s4 = inlined_call_operand.vmem [shape: f32[1,128], index: 4, kind: input, shape index: {}]   ;;  %s520_s5 = inlined_call_operand.vmem [shape: f32[16,128], index: 5, kind: output, shape index: {}]  }
   0x1   :  { %11 = vsyncpa [#allocation5], 0  ;;  %s440_s18 = smov [#allocation2]   ;;  %s392_s22 = scalar_lea.hbm %s516_s1, 1024 }
   0x2   :  { %s19_s19 = sshll.u32 %s440_s18, 4  ;;  %p393_p0 = scmp.ne.s32.totalorder %s516_s1, %s392_s22  ;;  %s20_s19 = int_to_ptr.vmem [resolvable:$true] %s19_s19 }
   0x3   :  { %p396_p1 = scmp.lt.u32.totalorder %s392_s22, %s516_s1 }
   0x5   :  { %p398_p2 = pnand %p396_p1, %p393_p0 }
   0x7   :  { %401 = shalt.err (!%p398_p2)
}
   0x8   :  { %s402_s27 = scalar_lea.vmem %s20_s19, 1024  ;;  %p407_p4 = scmp.lt.s32.totalorder %s20_s19, %s20_s19 }
   0x9   :  { %p403_p3 = scmp.ne.s32.totalorder %s20_s19, %s402_s27  ;;  %p408_p5 = scmp.lt.s32.totalorder %s402_s27, %s402_s27 }
   0xb   :  { %p409_p6 = por %p408_p5, %p407_p4 }
   0xd   :  { %p410_p7 = pnand %p409_p6, %p403_p3 }
   0xf   :  { %413 = shalt.err (!%p410_p7)
}
  0x10   :  { %s441_s28 = smov 64   ;;  %s442_s29 = smov 4  }
  0x11   :  { %25 = dma.hbm_to_vmem [thread:$0]  %s516_s1, 1024, %s20_s19, [#allocation3], %s441_s28, %s441_s28, %s442_s29  }
  0x12   :  { %s443_s7 = smov [#allocation4]   ;;  %s414_s11 = scalar_lea.hbm %s518_s3, 1024 }
  0x13   :  { %s33_s8 = sshll.u32 %s443_s7, 4  ;;  %p415_p8 = scmp.ne.s32.totalorder %s518_s3, %s414_s11  ;;  %s34_s8 = int_to_ptr.vmem [resolvable:$true] %s33_s8 }
  0x14   :  { %p418_p9 = scmp.lt.u32.totalorder %s414_s11, %s518_s3 }
  0x16   :  { %p420_p10 = pnand %p418_p9, %p415_p8 }
  0x18   :  { %423 = shalt.err (!%p420_p10)
}
  0x19   :  { %s424_s16 = scalar_lea.vmem %s34_s8, 1024  ;;  %p429_p12 = scmp.lt.s32.totalorder %s34_s8, %s34_s8 }
  0x1a   :  { %p425_p11 = scmp.ne.s32.totalorder %s34_s8, %s424_s16  ;;  %p430_p13 = scmp.lt.s32.totalorder %s424_s16, %s424_s16 }
  0x1c   :  { %p431_p0 = por %p430_p13, %p429_p12 }
  0x1e   :  { %p432_p1 = pnand %p431_p0, %p425_p11 }
  0x20   :  { %435 = shalt.err (!%p432_p1)
}
  0x21   :  { %39 = dma.hbm_to_vmem [thread:$0]  %s518_s3, 1024, %s34_s8, [#allocation5], %s441_s28, %s441_s28, %s442_s29  }
  0x22   :  { %436 = dma.done.wait [#allocation3], 1024  }
  0x23   :  { %437 = vsyncadd [#allocation3], 4294966272 }
  0x24   :  { %438 = dma.done.wait [#allocation5], 1024  }
  0x25   :  { %439 = vsyncadd [#allocation5], 4294966272  ;;  %v444_v0 = vmov 0.0   ;;  %vm445_vm0 = vmmov 0   ;;  %v375_v1 = vld [vmem:[#allocation2] sm:$0xff]   ;;  %v376_v2 = vld [vmem:[#allocation2 + $0x8] sm:$0xff]  }
  0x26   :  { %329 = vmatprep.subr.bf16.mxu0 %v444_v0  ;;  %345 = vmatprep.mubr.msk.bf16.mxu0 %vm445_vm0, %v444_v0  ;;  %v377_v3 = vld [vmem:[#allocation2 + $0x10] sm:$0xff]   ;;  %v384_v4 = vld [vmem:[#allocation4] sm:$0xff]   ;;  %v378_v5 = vld [vmem:[#allocation2 + $0x18] sm:$0xff]  }
  0x27   :  { %349 = vmatprep.subr.bf16.mxu1 %v444_v0  ;;  %365 = vmatprep.mubr.msk.bf16.mxu1 %vm445_vm0, %v444_v0  ;;  %v385_v6 = vld [vmem:[#allocation4 + $0x8] sm:$0xff]   ;;  %v379_v7 = vld [vmem:[#allocation2 + $0x20] sm:$0xff]   ;;  %v386_v8 = vld [vmem:[#allocation4 + $0x10] sm:$0xff]  }
  0x28   :  { %330 = vmatpush3.bf16.msra.mxu0 %v375_v1  ;;  %350 = vmatpush3.bf16.msra.mxu1 %v384_v4  ;;  %v380_v9 = vld [vmem:[#allocation2 + $0x28] sm:$0xff]   ;;  %v387_v10 = vld [vmem:[#allocation4 + $0x18] sm:$0xff]   ;;  %v381_v11 = vld [vmem:[#allocation2 + $0x30] sm:$0xff]  }
  0x29   :  { %331 = vmatprep.subr.bf16.mxu0 %v444_v0  ;;  %351 = vmatprep.subr.bf16.mxu1 %v444_v0  ;;  %v388_v12 = vld [vmem:[#allocation4 + $0x20] sm:$0xff]   ;;  %v382_v13 = vld [vmem:[#allocation2 + $0x38] sm:$0xff]   ;;  %v389_v14 = vld [vmem:[#allocation4 + $0x28] sm:$0xff]  }
  0x2a   :  { %v383_v15 = vld [vmem:[%s515_s0] sm:$0xff]   ;;  %v390_v16 = vld [vmem:[#allocation4 + $0x30] sm:$0xff]   ;;  %v391_v17 = vld [vmem:[#allocation4 + $0x38] sm:$0xff]  }
  0x2b   :  { %v292_v18 = vld [vmem:[%s517_s2] ss:$0 sm:$0xff] }
  0x2c   :  { %332 = vmatpush3.bf16.msra.mxu0 %v376_v2  ;;  %352 = vmatpush3.bf16.msra.mxu1 %v385_v6  ;;  %v302_v28 = vld [vmem:[%s519_s4] ss:$0 sm:$0xff] }
  0x2d   :  { %333 = vmatprep.subr.bf16.mxu0 %v444_v0  ;;  %353 = vmatprep.subr.bf16.mxu1 %v444_v0 }
  0x30   :  { %334 = vmatpush3.bf16.msra.mxu0 %v377_v3  ;;  %354 = vmatpush3.bf16.msra.mxu1 %v386_v8 }
  0x31   :  { %335 = vmatprep.subr.bf16.mxu0 %v444_v0  ;;  %355 = vmatprep.subr.bf16.mxu1 %v444_v0 }
  0x34   :  { %336 = vmatpush3.bf16.msra.mxu0 %v378_v5  ;;  %356 = vmatpush3.bf16.msra.mxu1 %v387_v10 }
  0x35   :  { %337 = vmatprep.subr.bf16.mxu0 %v444_v0  ;;  %357 = vmatprep.subr.bf16.mxu1 %v444_v0 }
  0x38   :  { %338 = vmatpush3.bf16.msra.mxu0 %v379_v7  ;;  %358 = vmatpush3.bf16.msra.mxu1 %v388_v12 }
  0x39   :  { %339 = vmatprep.subr.bf16.mxu0 %v444_v0  ;;  %359 = vmatprep.subr.bf16.mxu1 %v444_v0 }
  0x3c   :  { %340 = vmatpush3.bf16.msra.mxu0 %v380_v9  ;;  %360 = vmatpush3.bf16.msra.mxu1 %v389_v14 }
  0x3d   :  { %341 = vmatprep.subr.bf16.mxu0 %v444_v0  ;;  %361 = vmatprep.subr.bf16.mxu1 %v444_v0 }
  0x40   :  { %342 = vmatpush3.bf16.msra.mxu0 %v381_v11  ;;  %362 = vmatpush3.bf16.msra.mxu1 %v390_v16 }
  0x41   :  { %343 = vmatprep.subr.bf16.mxu0 %v444_v0  ;;  %363 = vmatprep.subr.bf16.mxu1 %v444_v0 }
  0x44   :  { %344 = vmatpush3.bf16.msra.mxu0 %v382_v13  ;;  %364 = vmatpush3.bf16.msra.mxu1 %v391_v17 }
  0x47   :  { %346 = vmatmul.mubr.bf16.vlgmr.msra.gmra.mrb[0].mxu0 %v383_v15 }
 0x11a   :  { %v162_v19 = vpop.f32.mrb[0].mxu0 }
 0x11b   :  { %v163_v20 = vadd.f32 %v292_v18, %v162_v19  ;;  %v347_v21 = vpop.f32.mrb[1].mxu0 }
 0x11c   :  { %v165_v22 = vpop.f32.mrb[2].mxu0 }
 0x11d   :  { %v166_v23 = vadd.f32 %v292_v18, %v165_v22  ;;  %v348_v24 = vpop.f32.mrb[3].mxu0  ;;  %v169_v25 = vmax.f32 %v163_v20, 0.0 }
 0x11f   :  { %v170_v26 = vmax.f32 %v166_v23, 0.0 }
 0x121   :  { %v171_v27 = vpack.c.bf16 %v170_v26, %v169_v25 }
 0x123   :  { %366 = vmatmul.mubr.bf16.vlgmr.msra.gmra.mrb[0].mxu1 %v171_v27 }
 0x1f6   :  { %v277_v29 = vpop.f32.mrb[0].mxu1 }
 0x1f7   :  { %v278_v30 = vadd.f32 %v302_v28, %v277_v29  ;;  %v367_v31 = vpop.f32.mrb[1].mxu1 }
 0x1f8   :  { %v280_v32 = vpop.f32.mrb[2].mxu1 }
 0x1f9   :  { %284 = vst [vmem:[%s520_s5] sm:$0xff] %v278_v30  ;;  %v281_v33 = vadd.f32 %v302_v28, %v280_v32  ;;  %v368_v34 = vpop.f32.mrb[3].mxu1 }
 0x1fb   :  { %285 = vst [vmem:[%s520_s5 + $0x8] sm:$0xff] %v281_v33 }
 0x1fc   :  { %290 = vsyncpa [#allocation3], 1 }
 0x1fd   :  { %291 = vsyncpa [#allocation5], 1 }

</bundles_post_ra>
